<compile_context>
chip_gen: v6e
topology: v6e:2x2x1
jax: 0.10.0
libtpu: 0.0.40
codegen_flags: <defaults>
</compile_context>

<pallas_src>
import functools

import jax
import jax.numpy as jnp
from jax import lax
from jax.experimental import pallas as pl
from jax.experimental.pallas import tpu as pltpu


def custom_conv_with_extra(x, extra_inputs, w_main, b_main, w_extra, b_extra,
                           *, compute_dtype=jnp.bfloat16):
    """Forward pass of CustomConvWithExtra.

    x            : [B, C_in, H, W]         (NCHW, like PyTorch)
    extra_inputs : [B, C_out * E] or None  (the 2-D form the PyTorch code supports)
    w_main       : [C_out, C_in, K, K], b_main : [C_out]
    w_extra      : [C_out, E, K, K],    b_extra: [C_out]
    returns      : [B, C_out, H_out, W_out] (NCHW)
    """
    B, C_in, H, W = x.shape
    C_out, _, K, _ = w_main.shape
    E = w_extra.shape[1]
    assert K >= 2, "stride = kernel_size // 2 requires kernel_size >= 2"

    p = K // 2
    s = K // 2                                   # PyTorch: stride = kernel_size // 2
    H_out = (H + 2 * p - K) // s + 1
    W_out = (W + 2 * p - K) // s + 1
    KK = K * K
    kk1 = KK + 1
    cdt = jnp.dtype(compute_dtype)
    out_dtype = x.dtype

    if extra_inputs is None:
        extra_inputs = jnp.zeros((B, C_out * E), x.dtype)

    # ---- glue: zero-pad + flatten the activation once (read/written once) ------
    Hp, Wp = H + 2 * p, W + 2 * p
    if Wp % s:                                   # row pitch divisible by the stride
        Wp += s - (Wp % s)
    xp = jnp.pad(x, ((0, 0), (0, 0), (p, p), (p, Wp - W - p)))   # [B,C_in,Hp,Wp]
    MP = H_out * Wp                              # per-sample padded-width-grid pixels
    max_off = (K - 1) * Wp + (K - 1)             # largest flat tap offset
    L = max(Hp * Wp, s * (MP - 1) + max_off + 1) # last flat element the kernel reads
    xflat = xp.reshape(B, C_in, Hp * Wp)
    if L > Hp * Wp:
        xflat = jnp.pad(xflat, ((0, 0), (0, 0), (0, L - Hp * Wp)))
    xflat = xflat.astype(cdt)                    # [B, C_in, L]  (bf16 by default)

    # ---- glue: main-conv weights, one (C_out, C_in) slab per tap ---------------
    w_taps = jnp.transpose(w_main, (2, 3, 0, 1)).reshape(KK, C_out, C_in).astype(cdt)

    # ---- glue: analytic "extra" branch + bias as a rank-(KK+1) additive term ---
    # Spatially-constant input conv with zero padding == per-tap in-bounds mask.
    ev = extra_inputs.reshape(B, C_out, E).astype(jnp.float32)
    A = jnp.einsum('oekl,boe->bokl', w_extra.astype(jnp.float32), ev)   # [B,Co,K,K]
    bias = (b_main + b_extra).astype(jnp.float32)[None, :, None]        # [1,Co,1]
    A_aug = jnp.concatenate(
        [A.reshape(B, C_out, KK), jnp.broadcast_to(bias, (B, C_out, 1))],
        axis=-1).astype(cdt)                                            # [B,Co,KK+1]

    pos_h = jnp.arange(H_out)[:, None] * s - p + jnp.arange(K)[None, :]
    pos_w = jnp.arange(W_out)[:, None] * s - p + jnp.arange(K)[None, :]
    inb_h = ((pos_h >= 0) & (pos_h < H)).astype(jnp.float32)            # [H_out,K]
    inb_w = ((pos_w >= 0) & (pos_w < W)).astype(jnp.float32)            # [W_out,K]
    inb_w = jnp.pad(inb_w, ((0, Wp - W_out), (0, 0)))                   # zero garbage cols
    mask = inb_h.T[:, None, :, None] * inb_w.T[None, :, None, :]        # [K,K,H_out,Wp]
    mask_aug = jnp.concatenate(
        [mask.reshape(KK, MP), jnp.ones((1, MP), jnp.float32)], axis=0).astype(cdt)

    # ---- hot path: per-sample deep contraction, lane-dense flat output ---------
    def kernel(w_ref, a_ref, m_ref, x_ref, o_ref):
        # additive term (extra branch + bias):  (C_out, KK+1) @ (KK+1, MP), f32 acc
        acc = jnp.dot(a_ref[...], m_ref[...], preferred_element_type=jnp.float32)
        for kh in range(K):
            for kw in range(K):
                off = kh * Wp + kw
                if s == 1:
                    slab = x_ref[:, pl.ds(off, MP)]          # static lane shift
                else:
                    # TODO(synk): lane-strided read path unverified for stride > 1.
                    slab = x_ref[:, pl.ds(off, MP, s)]
                acc = acc + jnp.dot(w_ref[kh * K + kw], slab,
                                    preferred_element_type=jnp.float32)
        o_ref[...] = acc.astype(o_ref.dtype)

    flops = 2 * B * C_out * (KK * C_in + kk1) * MP
    bytes_accessed = int(xflat.size * xflat.dtype.itemsize
                         + w_taps.size * w_taps.dtype.itemsize
                         + A_aug.size * A_aug.dtype.itemsize
                         + mask_aug.size * mask_aug.dtype.itemsize
                         + B * C_out * MP * jnp.dtype(out_dtype).itemsize)

    out_flat = pl.pallas_call(
        kernel,
        out_shape=jax.ShapeDtypeStruct((B, C_out, MP), out_dtype),
        grid=(B,),
        in_specs=[
            pl.BlockSpec((KK, C_out, C_in), lambda b: (0, 0, 0)),   # resident weights
            pl.BlockSpec((None, C_out, kk1), lambda b: (b, 0, 0)),  # per-sample A_aug
            pl.BlockSpec((kk1, MP), lambda b: (0, 0)),              # resident mask
            pl.BlockSpec((None, C_in, L), lambda b: (b, 0, 0)),     # per-sample input
        ],
        out_specs=pl.BlockSpec((None, C_out, MP), lambda b: (b, 0, 0)),
        compiler_params=pltpu.CompilerParams(
            dimension_semantics=("parallel",)),                     # megacore on v7x
        cost_estimate=pl.CostEstimate(flops=flops, transcendentals=0,
                                      bytes_accessed=bytes_accessed),
    )(w_taps, A_aug, mask_aug, xflat)

    # drop the 2*pad garbage columns of the padded-width grid -> NCHW output
    out = out_flat.reshape(B, C_out, H_out, Wp)[:, :, :, :W_out]
    return out


def _reference(x, extra_inputs, w_main, b_main, w_extra, b_extra):
    """Pure-JAX replica of the PyTorch forward (for verification)."""
    K = w_main.shape[-1]
    p = K // 2
    s = K // 2
    dn = ('NCHW', 'OIHW', 'NCHW')
    main = lax.conv_general_dilated(x, w_main, (s, s), [(p, p), (p, p)],
                                    dimension_numbers=dn)
    main = main + b_main[None, :, None, None]
    B, _, H, W = x.shape
    C_out = w_main.shape[0]
    E = w_extra.shape[1]
    outs = []
    for i in range(C_out):
        e = extra_inputs[:, i * E:(i + 1) * E].reshape(B, E, 1, 1)
        inp = jnp.broadcast_to(e, (B, E, H, W))
        o = lax.conv_general_dilated(inp, w_extra[i:i + 1].reshape(1, E, K, K),
                                     (s, s), [(p, p), (p, p)],
                                     dimension_numbers=dn) + b_extra[i]
        outs.append(o)
    return main + jnp.concatenate(outs, axis=1)


if __name__ == "__main__":
    B, C_in, C_out, K, E, H, W = 2, 4, 4, 3, 3, 16, 16

    key = jax.random.PRNGKey(0)
    ks = jax.random.split(key, 6)
    x = jax.random.normal(ks[0], (B, C_in, H, W), jnp.float32)
    extra = jax.random.normal(ks[1], (B, C_out * E), jnp.float32)
    w_main = jax.random.normal(ks[2], (C_out, C_in, K, K), jnp.float32) / jnp.sqrt(C_in * K * K)
    b_main = jax.random.normal(ks[3], (C_out,), jnp.float32) * 0.05
    w_extra = jax.random.normal(ks[4], (C_out, E, K, K), jnp.float32) / jnp.sqrt(E * K * K)
    b_extra = jax.random.normal(ks[5], (C_out,), jnp.float32) * 0.05

    ref = _reference(x, extra, w_main, b_main, w_extra, b_extra)

    # Strict f32 parity with the PyTorch forward.
    f32_fn = jax.jit(functools.partial(custom_conv_with_extra, compute_dtype=jnp.float32))
    out_f32 = jax.block_until_ready(f32_fn(x, extra, w_main, b_main, w_extra, b_extra))
    assert out_f32.shape == ref.shape, (out_f32.shape, ref.shape)
    err_f32 = float(jnp.max(jnp.abs(out_f32 - ref)))
    assert err_f32 < 1e-3, f"f32 max abs error {err_f32}"

    # Default fast path: bf16 operand streams, f32 accumulation.
    bf16_fn = jax.jit(custom_conv_with_extra)
    out_bf16 = jax.block_until_ready(bf16_fn(x, extra, w_main, b_main, w_extra, b_extra))
    err_bf16 = float(jnp.max(jnp.abs(out_bf16 - ref)))
    assert err_bf16 < 1e-1, f"bf16 max abs error {err_bf16}"

    print("KERNEL_OK")
</pallas_src>

<mosaic_0001>
module attributes {stable_mosaic.version = 11 : i64} {
  func.func @kernel(%arg0: i32, %arg1: memref<9x4x4xf32, #tpu.memory_space<vmem>>, %arg2: memref<1x4x10xf32, #tpu.memory_space<vmem>>, %arg3: memref<10x288xf32, #tpu.memory_space<vmem>>, %arg4: memref<1x4x326xf32, #tpu.memory_space<vmem>>, %arg5: memref<1x4x288xf32, #tpu.memory_space<vmem>>) attributes {dimension_semantics = [#tpu.dimension_semantics<parallel>], iteration_bounds = array<i64: 2>, scalar_prefetch = 0 : i64, scratch_operands = 0 : i64, tpu.core_type = #tpu.core_type<tc>, window_params = [{pipeline_mode = #tpu.pipeline_mode<synchronous>, transform_indices = @transform_0, window_bounds = array<i64: 9, 4, 4>}, {transform_indices = @transform_1, window_bounds = array<i64: 1, 4, 10>}, {pipeline_mode = #tpu.pipeline_mode<synchronous>, transform_indices = @transform_2, window_bounds = array<i64: 10, 288>}, {transform_indices = @transform_3, window_bounds = array<i64: 1, 4, 326>}, {transform_indices = @transform_4, window_bounds = array<i64: 1, 4, 288>}]} {
    %c0 = arith.constant 0 : index
    %c0_0 = arith.constant 0 : index
    %c0_1 = arith.constant 0 : index
    %0 = vector.load %arg2[%c0, %c0_0, %c0_1] : memref<1x4x10xf32, #tpu.memory_space<vmem>>, vector<1x4x10xf32>
    %1 = vector.shape_cast %0 : vector<1x4x10xf32> to vector<4x10xf32>
    %c0_2 = arith.constant 0 : index
    %c0_3 = arith.constant 0 : index
    %2 = vector.load %arg3[%c0_2, %c0_3] : memref<10x288xf32, #tpu.memory_space<vmem>>, vector<10x288xf32>
    %cst = arith.constant dense<0.000000e+00> : vector<4x288xf32>
    %3 = tpu.matmul %1, %2, %cst {dimension_numbers = #tpu.dot_dimension_numbers<[1], [0], [0], [1], [0, 0, 1, 1], [], []>} : vector<4x10xf32>, vector<10x288xf32>, vector<4x288xf32> -> vector<4x288xf32>
    %c0_4 = arith.constant 0 : index
    %c0_5 = arith.constant 0 : index
    %c0_6 = arith.constant 0 : index
    %4 = vector.load %arg4[%c0_4, %c0_5, %c0_6] : memref<1x4x326xf32, #tpu.memory_space<vmem>>, vector<1x4x288xf32>
    %5 = vector.shape_cast %4 : vector<1x4x288xf32> to vector<4x288xf32>
    %c0_7 = arith.constant 0 : index
    %c0_8 = arith.constant 0 : index
    %c0_9 = arith.constant 0 : index
    %6 = vector.load %arg1[%c0_7, %c0_8, %c0_9] : memref<9x4x4xf32, #tpu.memory_space<vmem>>, vector<1x4x4xf32>
    %7 = vector.shape_cast %6 : vector<1x4x4xf32> to vector<4x4xf32>
    %cst_10 = arith.constant dense<0.000000e+00> : vector<4x288xf32>
    %8 = tpu.matmul %7, %5, %cst_10 {dimension_numbers = #tpu.dot_dimension_numbers<[1], [0], [0], [1], [0, 0, 1, 1], [], []>} : vector<4x4xf32>, vector<4x288xf32>, vector<4x288xf32> -> vector<4x288xf32>
    %9 = arith.addf %3, %8 : vector<4x288xf32>
    %c0_11 = arith.constant 0 : index
    %c0_12 = arith.constant 0 : index
    %c1 = arith.constant 1 : index
    %10 = vector.load %arg4[%c0_11, %c0_12, %c1] : memref<1x4x326xf32, #tpu.memory_space<vmem>>, vector<1x4x288xf32>
    %11 = vector.shape_cast %10 : vector<1x4x288xf32> to vector<4x288xf32>
    %c1_13 = arith.constant 1 : index
    %c0_14 = arith.constant 0 : index
    %c0_15 = arith.constant 0 : index
    %12 = vector.load %arg1[%c1_13, %c0_14, %c0_15] : memref<9x4x4xf32, #tpu.memory_space<vmem>>, vector<1x4x4xf32>
    %13 = vector.shape_cast %12 : vector<1x4x4xf32> to vector<4x4xf32>
    %cst_16 = arith.constant dense<0.000000e+00> : vector<4x288xf32>
    %14 = tpu.matmul %13, %11, %cst_16 {dimension_numbers = #tpu.dot_dimension_numbers<[1], [0], [0], [1], [0, 0, 1, 1], [], []>} : vector<4x4xf32>, vector<4x288xf32>, vector<4x288xf32> -> vector<4x288xf32>
    %15 = arith.addf %9, %14 : vector<4x288xf32>
    %c0_17 = arith.constant 0 : index
    %c0_18 = arith.constant 0 : index
    %c2 = arith.constant 2 : index
    %16 = vector.load %arg4[%c0_17, %c0_18, %c2] : memref<1x4x326xf32, #tpu.memory_space<vmem>>, vector<1x4x288xf32>
    %17 = vector.shape_cast %16 : vector<1x4x288xf32> to vector<4x288xf32>
    %c2_19 = arith.constant 2 : index
    %c0_20 = arith.constant 0 : index
    %c0_21 = arith.constant 0 : index
    %18 = vector.load %arg1[%c2_19, %c0_20, %c0_21] : memref<9x4x4xf32, #tpu.memory_space<vmem>>, vector<1x4x4xf32>
    %19 = vector.shape_cast %18 : vector<1x4x4xf32> to vector<4x4xf32>
    %cst_22 = arith.constant dense<0.000000e+00> : vector<4x288xf32>
    %20 = tpu.matmul %19, %17, %cst_22 {dimension_numbers = #tpu.dot_dimension_numbers<[1], [0], [0], [1], [0, 0, 1, 1], [], []>} : vector<4x4xf32>, vector<4x288xf32>, vector<4x288xf32> -> vector<4x288xf32>
    %21 = arith.addf %15, %20 : vector<4x288xf32>
    %c0_23 = arith.constant 0 : index
    %c0_24 = arith.constant 0 : index
    %c18 = arith.constant 18 : index
    %22 = vector.load %arg4[%c0_23, %c0_24, %c18] : memref<1x4x326xf32, #tpu.memory_space<vmem>>, vector<1x4x288xf32>
    %23 = vector.shape_cast %22 : vector<1x4x288xf32> to vector<4x288xf32>
    %c3 = arith.constant 3 : index
    %c0_25 = arith.constant 0 : index
    %c0_26 = arith.constant 0 : index
    %24 = vector.load %arg1[%c3, %c0_25, %c0_26] : memref<9x4x4xf32, #tpu.memory_space<vmem>>, vector<1x4x4xf32>
    %25 = vector.shape_cast %24 : vector<1x4x4xf32> to vector<4x4xf32>
    %cst_27 = arith.constant dense<0.000000e+00> : vector<4x288xf32>
    %26 = tpu.matmul %25, %23, %cst_27 {dimension_numbers = #tpu.dot_dimension_numbers<[1], [0], [0], [1], [0, 0, 1, 1], [], []>} : vector<4x4xf32>, vector<4x288xf32>, vector<4x288xf32> -> vector<4x288xf32>
    %27 = arith.addf %21, %26 : vector<4x288xf32>
    %c0_28 = arith.constant 0 : index
    %c0_29 = arith.constant 0 : index
    %c19 = arith.constant 19 : index
    %28 = vector.load %arg4[%c0_28, %c0_29, %c19] : memref<1x4x326xf32, #tpu.memory_space<vmem>>, vector<1x4x288xf32>
    %29 = vector.shape_cast %28 : vector<1x4x288xf32> to vector<4x288xf32>
    %c4 = arith.constant 4 : index
    %c0_30 = arith.constant 0 : index
    %c0_31 = arith.constant 0 : index
    %30 = vector.load %arg1[%c4, %c0_30, %c0_31] : memref<9x4x4xf32, #tpu.memory_space<vmem>>, vector<1x4x4xf32>
    %31 = vector.shape_cast %30 : vector<1x4x4xf32> to vector<4x4xf32>
    %cst_32 = arith.constant dense<0.000000e+00> : vector<4x288xf32>
    %32 = tpu.matmul %31, %29, %cst_32 {dimension_numbers = #tpu.dot_dimension_numbers<[1], [0], [0], [1], [0, 0, 1, 1], [], []>} : vector<4x4xf32>, vector<4x288xf32>, vector<4x288xf32> -> vector<4x288xf32>
    %33 = arith.addf %27, %32 : vector<4x288xf32>
    %c0_33 = arith.constant 0 : index
    %c0_34 = arith.constant 0 : index
    %c20 = arith.constant 20 : index
    %34 = vector.load %arg4[%c0_33, %c0_34, %c20] : memref<1x4x326xf32, #tpu.memory_space<vmem>>, vector<1x4x288xf32>
    %35 = vector.shape_cast %34 : vector<1x4x288xf32> to vector<4x288xf32>
    %c5 = arith.constant 5 : index
    %c0_35 = arith.constant 0 : index
    %c0_36 = arith.constant 0 : index
    %36 = vector.load %arg1[%c5, %c0_35, %c0_36] : memref<9x4x4xf32, #tpu.memory_space<vmem>>, vector<1x4x4xf32>
    %37 = vector.shape_cast %36 : vector<1x4x4xf32> to vector<4x4xf32>
    %cst_37 = arith.constant dense<0.000000e+00> : vector<4x288xf32>
    %38 = tpu.matmul %37, %35, %cst_37 {dimension_numbers = #tpu.dot_dimension_numbers<[1], [0], [0], [1], [0, 0, 1, 1], [], []>} : vector<4x4xf32>, vector<4x288xf32>, vector<4x288xf32> -> vector<4x288xf32>
    %39 = arith.addf %33, %38 : vector<4x288xf32>
    %c0_38 = arith.constant 0 : index
    %c0_39 = arith.constant 0 : index
    %c36 = arith.constant 36 : index
    %40 = vector.load %arg4[%c0_38, %c0_39, %c36] : memref<1x4x326xf32, #tpu.memory_space<vmem>>, vector<1x4x288xf32>
    %41 = vector.shape_cast %40 : vector<1x4x288xf32> to vector<4x288xf32>
    %c6 = arith.constant 6 : index
    %c0_40 = arith.constant 0 : index
    %c0_41 = arith.constant 0 : index
    %42 = vector.load %arg1[%c6, %c0_40, %c0_41] : memref<9x4x4xf32, #tpu.memory_space<vmem>>, vector<1x4x4xf32>
    %43 = vector.shape_cast %42 : vector<1x4x4xf32> to vector<4x4xf32>
    %cst_42 = arith.constant dense<0.000000e+00> : vector<4x288xf32>
    %44 = tpu.matmul %43, %41, %cst_42 {dimension_numbers = #tpu.dot_dimension_numbers<[1], [0], [0], [1], [0, 0, 1, 1], [], []>} : vector<4x4xf32>, vector<4x288xf32>, vector<4x288xf32> -> vector<4x288xf32>
    %45 = arith.addf %39, %44 : vector<4x288xf32>
    %c0_43 = arith.constant 0 : index
    %c0_44 = arith.constant 0 : index
    %c37 = arith.constant 37 : index
    %46 = vector.load %arg4[%c0_43, %c0_44, %c37] : memref<1x4x326xf32, #tpu.memory_space<vmem>>, vector<1x4x288xf32>
    %47 = vector.shape_cast %46 : vector<1x4x288xf32> to vector<4x288xf32>
    %c7 = arith.constant 7 : index
    %c0_45 = arith.constant 0 : index
    %c0_46 = arith.constant 0 : index
    %48 = vector.load %arg1[%c7, %c0_45, %c0_46] : memref<9x4x4xf32, #tpu.memory_space<vmem>>, vector<1x4x4xf32>
    %49 = vector.shape_cast %48 : vector<1x4x4xf32> to vector<4x4xf32>
    %cst_47 = arith.constant dense<0.000000e+00> : vector<4x288xf32>
    %50 = tpu.matmul %49, %47, %cst_47 {dimension_numbers = #tpu.dot_dimension_numbers<[1], [0], [0], [1], [0, 0, 1, 1], [], []>} : vector<4x4xf32>, vector<4x288xf32>, vector<4x288xf32> -> vector<4x288xf32>
    %51 = arith.addf %45, %50 : vector<4x288xf32>
    %c0_48 = arith.constant 0 : index
    %c0_49 = arith.constant 0 : index
    %c38 = arith.constant 38 : index
    %52 = vector.load %arg4[%c0_48, %c0_49, %c38] : memref<1x4x326xf32, #tpu.memory_space<vmem>>, vector<1x4x288xf32>
    %53 = vector.shape_cast %52 : vector<1x4x288xf32> to vector<4x288xf32>
    %c8 = arith.constant 8 : index
    %c0_50 = arith.constant 0 : index
    %c0_51 = arith.constant 0 : index
    %54 = vector.load %arg1[%c8, %c0_50, %c0_51] : memref<9x4x4xf32, #tpu.memory_space<vmem>>, vector<1x4x4xf32>
    %55 = vector.shape_cast %54 : vector<1x4x4xf32> to vector<4x4xf32>
    %cst_52 = arith.constant dense<0.000000e+00> : vector<4x288xf32>
    %56 = tpu.matmul %55, %53, %cst_52 {dimension_numbers = #tpu.dot_dimension_numbers<[1], [0], [0], [1], [0, 0, 1, 1], [], []>} : vector<4x4xf32>, vector<4x288xf32>, vector<4x288xf32> -> vector<4x288xf32>
    %57 = arith.addf %51, %56 : vector<4x288xf32>
    %c0_53 = arith.constant 0 : index
    %c0_54 = arith.constant 0 : index
    %c0_55 = arith.constant 0 : index
    %58 = vector.load %arg5[%c0_53, %c0_54, %c0_55] : memref<1x4x288xf32, #tpu.memory_space<vmem>>, vector<1x4x288xf32>
    %59 = vector.shape_cast %58 : vector<1x4x288xf32> to vector<4x288xf32>
    %60 = vector.shape_cast %57 : vector<4x288xf32> to vector<1x4x288xf32>
    tpu.vector_store %arg5[%c0_53, %c0_54, %c0_55], %60 {strides = array<i32>} : memref<1x4x288xf32, #tpu.memory_space<vmem>>, vector<1x4x288xf32>,
    return
  }
  func.func @transform_0(%arg0: i32) -> (i32, i32, i32) {
    %c0_i32 = arith.constant 0 : i32
    %c0_i32_0 = arith.constant 0 : i32
    %c0_i32_1 = arith.constant 0 : i32
    %c0_i32_2 = arith.constant 0 : i32
    return %c0_i32, %c0_i32_0, %c0_i32_1 : i32, i32, i32
  }
  func.func @transform_1(%arg0: i32) -> (i32, i32, i32) {
    %c0_i32 = arith.constant 0 : i32
    %c0_i32_0 = arith.constant 0 : i32
    %c0_i32_1 = arith.constant 0 : i32
    return %arg0, %c0_i32, %c0_i32_0 : i32, i32, i32
  }
  func.func @transform_2(%arg0: i32) -> (i32, i32) {
    %c0_i32 = arith.constant 0 : i32
    %c0_i32_0 = arith.constant 0 : i32
    %c0_i32_1 = arith.constant 0 : i32
    return %c0_i32, %c0_i32_0 : i32, i32
  }
  func.func @transform_3(%arg0: i32) -> (i32, i32, i32) {
    %c0_i32 = arith.constant 0 : i32
    %c0_i32_0 = arith.constant 0 : i32
    %c0_i32_1 = arith.constant 0 : i32
    return %arg0, %c0_i32, %c0_i32_0 : i32, i32, i32
  }
  func.func @transform_4(%arg0: i32) -> (i32, i32, i32) {
    %c0_i32 = arith.constant 0 : i32
    %c0_i32_0 = arith.constant 0 : i32
    %c0_i32_1 = arith.constant 0 : i32
    return %arg0, %c0_i32, %c0_i32_0 : i32, i32, i32
  }
}

</mosaic_0001>

<bundles_post_ra>
// kernel: custom_conv_with_extra.1
= control target key start
LH: loop header
LB: loop body
LE: loop exit
PB: predicated region body
PF: predicated region fallthrough
CT: control target
= control target key end

     0   :  { %s2165_s15 = smov 0   ;;  %s2374_s0 = inlined_call_operand.vmem [shape: f32[9,4,4], index: 0, kind: input, shape index: {}]   ;;  %s2375_s1 = inlined_call_operand.vmem [shape: f32[2,4,10], index: 1, kind: input, shape index: {}]   ;;  %s2376_s2 = inlined_call_operand.vmem [shape: f32[10,288], index: 2, kind: input, shape index: {}]   ;;  %s2377_s3 = inlined_call_operand.vmem [shape: f32[2,4,326], index: 3, kind: input, shape index: {}]   ;;  %s2378_s4 = inlined_call_operand.vmem [shape: f32[2,4,288], index: 4, kind: output, shape index: {}]  }
   0x1 LB: > { %s1961_s16 = sadd.s32 4294967295, %s2128_s15   ;;  %p1965_p0 = scmp.ge.s32.totalorder %s2128_s15, 1  ;;  %s2128_s15 = sphi %s2165_s15, %s14_s15  }
   0x2   : > { %p171_p1 = scmp.lt.s32.totalorder %s2128_s15, 3 }
   0x4   : > { %p172_p2 = pnand %p1965_p0, %p171_p1 }
   0x5   : > { %p201_p3 = scmp.lt.s32.totalorder (!%p172_p2), %s1961_s16, 1  ;;  %s2132_s21 = smov (!%p172_p2), 127  }
   0x6   : > { %175 = sbr.rel (%p172_p2) target bundleno = 378 (0x17a), region = 36  ;;  %s2133_s27 = smov (!%p172_p2), 126  }
   0x7   : > { %s2134_s18 = smov (!%p172_p2), 110   ;;  %s2135_s19 = smov (!%p172_p2), 109  }
   0x8   : > { %s2138_s23 = smov (!%p172_p2), 91   ;;  %s2139_s24 = smov (!%p172_p2), 90  }
   0xb   : > { %v2130_v0 = vmov 0.0   ;;  %vm2131_vm0 = vmmov 0   ;;  %s2380_s16 = smov (!%p201_p3, %s1961_s16), 1  ;;  %vm232_vm1 = vcmask 1043456   ;;  %v224_v6 = vld [vmem:[%s2374_s0] sm:$0xf] }
   0xc   : > { %2050 = vmatprep.subr.mxu1 %v2130_v0  ;;  %2052 = vmatprep.mubr.msk.f32.mxu1 %vm2131_vm0, %v2130_v0  ;;  %s2102_s17 = smul.u32 12, %s2380_s16  ;;  %s1966_s22 = sshll.u32 %s2380_s16, 2  ;;  %vm228_vm2 = vcmask 31744   ;;  %v221_v7 = vld [vmem:[%s2376_s2 + $0x28] sm:$0x3]  ;;  %vm384_vm3 = vcmask 1041408  }
   0xd   : > { %303 = vmatprep.mubr.f32.mxu0 %v2130_v0  ;;  %s204_s30 = scalar_lea.vmem %s2375_s1, %s1966_s22  ;;  %v218_v8 = vld [vmem:[%s2376_s2 + $0x10] sm:$0xff]  ;;  %v220_v9 = vld [vmem:[%s2376_s2 + $0x20] sm:$0x3]  ;;  %vm380_vm4 = vcmask 80896   ;;  %v219_v11 = vld [vmem:[%s2376_s2 + $0x18] sm:$0x3] }
   0xe   : > { %s2185_s20 = scalar_lea.vmem %s2377_s3, %s2102_s17  ;;  %v215_v10 = vld [vmem:[%s204_s30] sm:$0xf]  ;;  %v217_v13 = vld [vmem:[%s2376_s2 + $0x8] sm:$0xff]  ;;  %s2137_s22 = smov 92   ;;  %v1979_v20 = vld [vmem:[%s2374_s0 + $0x4] sm:$0xf] }
   0xf   : > { %v536_v1 = vld [vmem:[%s2185_s20 + $0x8] sm:$0xf]  ;;  %v2189_v2 = vld [vmem:[%s2185_s20] sm:$0xff]  ;;  %vm548_vm5 = vcmask 1039360   ;;  %vm717_vm6 = vcmask 1031168   ;;  %vm886_vm7 = vcmask 900096  }
  0x10   : > { %546 = vrot.lane.b32.xlu0 %v536_v1, %s2132_s21  ;;  %542 = vrot.lane.b32.xlu1 %v2189_v2, %s2132_s21  ;;  %v2196_v3 = vcombine.high %v2189_v2, %v2189_v2  ;;  %v705_v4 = vld [vmem:[%s2185_s20 + $0x8] sm:$0xf]  ;;  %v216_v14 = vld [vmem:[%s2376_s2] sm:$0xff]  ;;  %vm1055_vm8 = vcmask 891904   ;;  %vm1224_vm9 = vcmask 883712   ;;  %vm1393_vm10 = vcmask 752640  }
  0x11   : > { %v223_v5 = vld [vmem:[%s2185_s20 + $0x8] sm:$0xf]  ;;  %v1991_v34 = vld [vmem:[%s2374_s0 + $0xc] sm:$0xf]  ;;  %v1997_v39 = vld [vmem:[%s2374_s0 + $0x10] sm:$0xf] }
  0x12   : > { %1969 = vmatprep.subr.msk.mxu0 %vm232_vm1, %v2196_v3  ;;  %2051 = vmatpush3.msk.msra.mxu1 %vm232_vm1, %v223_v5  ;;  %v874_v12 = vld [vmem:[%s2185_s20 + $0x8] sm:$0xf]  ;;  %v2003_v44 = vld [vmem:[%s2374_s0 + $0x14] sm:$0xf]  ;;  %v2009_v51 = vld [vmem:[%s2374_s0 + $0x18] sm:$0xf] }
  0x13   : > { %1970 = vmatpush1.msk.msra.mxu0 %vm232_vm1, %v2189_v2  ;;  %2055 = vmatprep.subr.mxu1 %v2130_v0  ;;  %v1043_v15 = vld [vmem:[%s2185_s20 + $0x8] sm:$0xf]  ;;  %vm1562_vm11 = vcmask 744448   ;;  %v2015_v56 = vld [vmem:[%s2374_s0 + $0x1c] sm:$0xf]  ;;  %vm1731_vm12 = vcmask 736256  }
  0x14   : > { %715 = vrot.lane.b32.xlu0 %v705_v4, %s2133_s27  ;;  %711 = vrot.lane.b32.xlu1 %v2189_v2, %s2133_s27  ;;  %v1212_v16 = vld [vmem:[%s2185_s20 + $0x8] sm:$0xf]  ;;  %v2021_v63 = vld [vmem:[%s2374_s0 + $0x20] sm:$0xf]  ;;  %vm1892_vm13 = vcmask 257024  }
  0x15   : > { %2053 = vmatmul.mubr.msk.f32.vlgmr.msra.gmra.mxu1 %vm228_vm2, %v224_v6  ;;  %1971 = vmatmul.mubr.msk.f32.vlgmr.msra.gmra.mxu0 %vm228_vm2, %v224_v6  ;;  %v1381_v17 = vld [vmem:[%s2185_s20 + $0x8] sm:$0xf] }
  0x16   : > { %2056 = vmatpush3.msk.msra.mxu1 %vm384_vm3, %v221_v7  ;;  %2059 = vmatprep.mubr.msk.f32.mxu1 %vm2131_vm0, %v2130_v0  ;;  %v1550_v18 = vld [vmem:[%s2185_s20 + $0x8] sm:$0xf] }
  0x17   : > { %2057 = vmatprep.subr.mxu1 %v2130_v0  ;;  %1974 = vmatprep.subr.msk.mxu0 %vm384_vm3, %v220_v9  ;;  %v1719_v19 = vld [vmem:[%s2185_s20 + $0x8] sm:$0xf] }
  0x18   : > { %713 = vrot.lane.b32.xlu1 %v2196_v3, %s2133_s27  ;;  %544 = vrot.lane.b32.xlu0 %v2196_v3, %s2132_s21  ;;  %s2136_s21 = smov 108   ;;  %v1985_v23 = vld [vmem:[%s2374_s0 + $0x8] sm:$0xf] }
  0x19   : > { %2058 = vmatpush3.msra.mxu1 %v218_v8  ;;  %1975 = vmatpush1.msk.msra.mxu0 %vm384_vm3, %v219_v11 }
  0x1a   : > { %2062 = vmatprep.subr.mxu1 %v2130_v0  ;;  %2060 = vmatmul.mubr.msk.f32.vlgmr.msra.gmra.mxu1 %vm380_vm4, %v215_v10 }
  0x1b   : > { %2064 = vmatprep.mubr.msk.f32.mxu1 %vm2131_vm0, %v2130_v0  ;;  %424 = vmatprep.subr.mxu0 %v217_v13 }
  0x1c   : > { %884 = vrot.lane.b32.xlu1 %v874_v12, %s2134_s18  ;;  %882 = vrot.lane.b32.xlu0 %v2196_v3, %s2134_s18 }
  0x1d   : > { %458 = vmatprep.mubr.f32.mxu0 %v2130_v0  ;;  %425 = vmatpush1.msra.mxu0 %v216_v14 }
  0x1e   : > { %1976 = vmatmul.mubr.msk.f32.vlgmr.msra.gmra.mxu0 %vm380_vm4, %v215_v10 }
  0x1f   : > { %624 = vmatprep.mubr.f32.mxu0 %v2130_v0 }
  0x20   : > { %1051 = vrot.lane.b32.xlu1 %v2196_v3, %s2135_s19  ;;  %880 = vrot.lane.b32.xlu0 %v2189_v2, %s2134_s18 }
  0x24   : > { %1049 = vrot.lane.b32.xlu1 %v2189_v2, %s2135_s19  ;;  %1053 = vrot.lane.b32.xlu0 %v1043_v15, %s2135_s19  ;;  %s214_s19 = scalar_lea.vmem %s2378_s4, %s2102_s17 }
  0x28   : > { %1222 = vrot.lane.b32.xlu1 %v1212_v16, %s2136_s21  ;;  %1220 = vrot.lane.b32.xlu0 %v2196_v3, %s2136_s21 }
  0x2c   : > { %1389 = vrot.lane.b32.xlu1 %v2196_v3, %s2137_s22  ;;  %1218 = vrot.lane.b32.xlu0 %v2189_v2, %s2136_s21 }
  0x30   : > { %1387 = vrot.lane.b32.xlu1 %v2189_v2, %s2137_s22  ;;  %1391 = vrot.lane.b32.xlu0 %v1381_v17, %s2137_s22 }
  0x34   : > { %1560 = vrot.lane.b32.xlu1 %v1550_v18, %s2138_s23  ;;  %1558 = vrot.lane.b32.xlu0 %v2196_v3, %s2138_s23 }
  0x38   : > { %1727 = vrot.lane.b32.xlu1 %v2196_v3, %s2139_s24  ;;  %1556 = vrot.lane.b32.xlu0 %v2189_v2, %s2138_s23 }
  0x3c   : > { %1725 = vrot.lane.b32.xlu1 %v2189_v2, %s2139_s24  ;;  %1729 = vrot.lane.b32.xlu0 %v1719_v19, %s2139_s24 }
  0x82   : > { %v547_v21 = vpop.permute.xlu0 %546  ;;  %v543_v22 = vpop.permute.xlu1 %542 }
  0x83   : > { %2063 = vmatpush3.msk.msra.mxu1 %vm232_vm1, %v547_v21 }
  0x84   : > { %2067 = vmatprep.subr.mxu1 %v2130_v0  ;;  %2065 = vmatmul.mubr.msk.f32.vlgmr.msra.gmra.mxu1 %vm228_vm2, %v1979_v20 }
  0x85   : > { %2069 = vmatprep.mubr.msk.f32.mxu1 %vm2131_vm0, %v2130_v0 }
  0x86   : > { %v716_v24 = vpop.permute.xlu0 %715  ;;  %v712_v25 = vpop.permute.xlu1 %711 }
  0x87   : > { %2068 = vmatpush3.msk.msra.mxu1 %vm232_vm1, %v716_v24 }
  0x88   : > { %2072 = vmatprep.subr.mxu1 %v2130_v0  ;;  %2070 = vmatmul.mubr.msk.f32.vlgmr.msra.gmra.mxu1 %vm228_vm2, %v1985_v23 }
  0x89   : > { %2074 = vmatprep.mubr.msk.f32.mxu1 %vm2131_vm0, %v2130_v0 }
  0x8a   : > { %v714_v26 = vpop.permute.xlu1 %713  ;;  %v545_v27 = vpop.permute.xlu0 %544 }
  0x8b   : > { %v549_v28 = vsel %vm548_vm5, %v543_v22, %v545_v27  ;;  %v550_v29 = vsel %vm548_vm5, %v545_v27, %v547_v21  ;;  %v719_v30 = vsel %vm717_vm6, %v714_v26, %v716_v24  ;;  %v718_v31 = vsel %vm717_vm6, %v712_v25, %v714_v26 }
  0x8c   : > { %1980 = vmatprep.subr.msk.mxu0 %vm232_vm1, %v550_v29 }
  0x8d   : > { %1981 = vmatpush1.msk.msra.mxu0 %vm232_vm1, %v549_v28 }
  0x8e   : > { %v885_v32 = vpop.permute.xlu1 %884  ;;  %v883_v33 = vpop.permute.xlu0 %882  ;;  %1982 = vmatmul.mubr.msk.f32.vlgmr.msra.gmra.mxu0 %vm228_vm2, %v1979_v20  ;;  %1986 = vmatprep.subr.msk.mxu0 %vm232_vm1, %v719_v30 }
  0x8f   : > { %v888_v35 = vsel %vm886_vm7, %v883_v33, %v885_v32  ;;  %1987 = vmatpush1.msk.msra.mxu0 %vm232_vm1, %v718_v31  ;;  %2073 = vmatpush3.msk.msra.mxu1 %vm232_vm1, %v885_v32 }
  0x90   : > { %1992 = vmatprep.subr.msk.mxu0 %vm232_vm1, %v888_v35  ;;  %793 = vmatprep.mubr.f32.mxu0 %v2130_v0 }
  0x91   : > { %2077 = vmatprep.subr.mxu1 %v2130_v0  ;;  %2075 = vmatmul.mubr.msk.f32.vlgmr.msra.gmra.mxu1 %vm228_vm2, %v1991_v34 }
  0x92   : > { %v1052_v36 = vpop.permute.xlu1 %1051  ;;  %v881_v37 = vpop.permute.xlu0 %880  ;;  %1988 = vmatmul.mubr.msk.f32.vlgmr.msra.gmra.mxu0 %vm228_vm2, %v1985_v23  ;;  %2079 = vmatprep.mubr.msk.f32.mxu1 %vm2131_vm0, %v2130_v0 }
  0x93   : > { %v887_v38 = vsel %vm886_vm7, %v881_v37, %v883_v33  ;;  %962 = vmatprep.mubr.f32.mxu0 %v2130_v0 }
  0x94   : > { %1993 = vmatpush1.msk.msra.mxu0 %vm232_vm1, %v887_v38 }
  0x96   : > { %v1050_v40 = vpop.permute.xlu1 %1049  ;;  %v1054_v41 = vpop.permute.xlu0 %1053  ;;  %1994 = vmatmul.mubr.msk.f32.vlgmr.msra.gmra.mxu0 %vm228_vm2, %v1991_v34 }
  0x97   : > { %v1056_v42 = vsel %vm1055_vm8, %v1050_v40, %v1052_v36  ;;  %v1057_v43 = vsel %vm1055_vm8, %v1052_v36, %v1054_v41  ;;  %2078 = vmatpush3.msk.msra.mxu1 %vm232_vm1, %v1054_v41  ;;  %1131 = vmatprep.mubr.f32.mxu0 %v2130_v0 }
  0x98   : > { %1998 = vmatprep.subr.msk.mxu0 %vm232_vm1, %v1057_v43  ;;  %2080 = vmatmul.mubr.msk.f32.vlgmr.msra.gmra.mxu1 %vm228_vm2, %v1997_v39 }
  0x99   : > { %1999 = vmatpush1.msk.msra.mxu0 %vm232_vm1, %v1056_v42  ;;  %2082 = vmatprep.subr.mxu1 %v2130_v0 }
  0x9a   : > { %v1223_v45 = vpop.permute.xlu1 %1222  ;;  %v1221_v46 = vpop.permute.xlu0 %1220  ;;  %2000 = vmatmul.mubr.msk.f32.vlgmr.msra.gmra.mxu0 %vm228_vm2, %v1997_v39  ;;  %2084 = vmatprep.mubr.msk.f32.mxu1 %vm2131_vm0, %v2130_v0 }
  0x9b   : > { %v1226_v47 = vsel %vm1224_vm9, %v1221_v46, %v1223_v45  ;;  %2083 = vmatpush3.msk.msra.mxu1 %vm232_vm1, %v1223_v45  ;;  %1300 = vmatprep.mubr.f32.mxu0 %v2130_v0 }
  0x9c   : > { %2004 = vmatprep.subr.msk.mxu0 %vm232_vm1, %v1226_v47  ;;  %2085 = vmatmul.mubr.msk.f32.vlgmr.msra.gmra.mxu1 %vm228_vm2, %v2003_v44 }
  0x9d   : > { %2087 = vmatprep.subr.mxu1 %v2130_v0  ;;  %2089 = vmatprep.mubr.msk.f32.mxu1 %vm2131_vm0, %v2130_v0 }
  0x9e   : > { %v1390_v48 = vpop.permute.xlu1 %1389  ;;  %v1219_v49 = vpop.permute.xlu0 %1218 }
  0x9f   : > { %v1225_v50 = vsel %vm1224_vm9, %v1219_v49, %v1221_v46 }
  0xa0   : > { %2005 = vmatpush1.msk.msra.mxu0 %vm232_vm1, %v1225_v50 }
  0xa1   : > { %2006 = vmatmul.mubr.msk.f32.vlgmr.msra.gmra.mxu0 %vm228_vm2, %v2003_v44 }
  0xa2   : > { %v1388_v52 = vpop.permute.xlu1 %1387  ;;  %v1392_v53 = vpop.permute.xlu0 %1391  ;;  %1469 = vmatprep.mubr.f32.mxu0 %v2130_v0 }
  0xa3   : > { %v1394_v54 = vsel %vm1393_vm10, %v1388_v52, %v1390_v48  ;;  %v1395_v55 = vsel %vm1393_vm10, %v1390_v48, %v1392_v53  ;;  %2088 = vmatpush3.msk.msra.mxu1 %vm232_vm1, %v1392_v53 }
  0xa4   : > { %2010 = vmatprep.subr.msk.mxu0 %vm232_vm1, %v1395_v55  ;;  %2090 = vmatmul.mubr.msk.f32.vlgmr.msra.gmra.mxu1 %vm228_vm2, %v2009_v51 }
  0xa5   : > { %2011 = vmatpush1.msk.msra.mxu0 %vm232_vm1, %v1394_v54  ;;  %2092 = vmatprep.subr.mxu1 %v2130_v0 }
  0xa6   : > { %v1561_v57 = vpop.permute.xlu1 %1560  ;;  %v1559_v58 = vpop.permute.xlu0 %1558  ;;  %2012 = vmatmul.mubr.msk.f32.vlgmr.msra.gmra.mxu0 %vm228_vm2, %v2009_v51  ;;  %2094 = vmatprep.mubr.msk.f32.mxu1 %vm2131_vm0, %v2130_v0 }
  0xa7   : > { %v1564_v59 = vsel %vm1562_vm11, %v1559_v58, %v1561_v57  ;;  %2093 = vmatpush3.msk.msra.mxu1 %vm232_vm1, %v1561_v57  ;;  %1638 = vmatprep.mubr.f32.mxu0 %v2130_v0 }
  0xa8   : > { %2016 = vmatprep.subr.msk.mxu0 %vm232_vm1, %v1564_v59  ;;  %2095 = vmatmul.mubr.msk.f32.vlgmr.msra.gmra.mxu1 %vm228_vm2, %v2015_v56 }
  0xa9   : > { %2097 = vmatprep.subr.mxu1 %v2130_v0  ;;  %2099 = vmatprep.mubr.msk.f32.mxu1 %vm2131_vm0, %v2130_v0 }
  0xaa   : > { %v1728_v60 = vpop.permute.xlu1 %1727  ;;  %v1557_v61 = vpop.permute.xlu0 %1556 }
  0xab   : > { %v1563_v62 = vsel %vm1562_vm11, %v1557_v61, %v1559_v58 }
  0xac   : > { %2017 = vmatpush1.msk.msra.mxu0 %vm232_vm1, %v1563_v62 }
  0xad   : > { %2018 = vmatmul.mubr.msk.f32.vlgmr.msra.gmra.mxu0 %vm228_vm2, %v2015_v56 }
  0xae   : > { %v1726_v1 = vpop.permute.xlu1 %1725  ;;  %v1730_v2 = vpop.permute.xlu0 %1729  ;;  %1807 = vmatprep.mubr.f32.mxu0 %v2130_v0 }
  0xaf   : > { %v1732_v3 = vsel %vm1731_vm12, %v1726_v1, %v1728_v60  ;;  %v1733_v4 = vsel %vm1731_vm12, %v1728_v60, %v1730_v2  ;;  %2098 = vmatpush3.msk.msra.mxu1 %vm232_vm1, %v1730_v2 }
  0xb0   : > { %2022 = vmatprep.subr.msk.mxu0 %vm232_vm1, %v1733_v4  ;;  %2100 = vmatmul.mubr.msk.f32.vlgmr.msra.gmra.mxu1 %vm228_vm2, %v2021_v63 }
  0xb1   : > { %2023 = vmatpush1.msk.msra.mxu0 %vm232_vm1, %v1732_v3 }
  0xb2   : > { %2024 = vmatmul.mubr.msk.f32.vlgmr.msra.gmra.mxu0 %vm228_vm2, %v2021_v63 }
  0xd5   : > { %v376_v5 = vpop.f32.mrf.mxu1  ;;  %v305_v10 = vpop.f32.mrf.mxu0 }
  0xd7   : > { %v2054_v6 = vpop.f32.mrf.mxu1  ;;  %v307_v11 = vpop.f32.mrf.mxu0 }
  0xda   : > { %v531_v7 = vpop.f32.mrf.mxu1 }
  0xdb   : > { %v532_v8 = vadd.f32 %v531_v7, %v376_v5 }
  0xdc   : > { %v2061_v9 = vpop.f32.mrf.mxu1 }
  0xde   : > { %v460_v12 = vpop.f32.mrf.mxu0 }
  0xdf   : > { %v461_v33 = vadd.f32 %v460_v12, %v305_v10 }
  0xe0   : > { %v462_v15 = vpop.f32.mrf.mxu0 }
  0xe1   : > { %v463_v35 = vadd.f32 %v462_v15, %v307_v11 }
 0x144   : > { %v697_v0 = vpop.f32.mrf.mxu1 }
 0x145   : > { %v703_v27 = vadd.f32 %v697_v0, %v532_v8 }
 0x146   : > { %v2066_v13 = vpop.f32.mrf.mxu1 }
 0x148   : > { %v866_v14 = vpop.f32.mrf.mxu1 }
 0x149   : > { %v872_v31 = vadd.f32 %v866_v14, %v703_v27 }
 0x14a   : > { %v2071_v16 = vpop.f32.mrf.mxu1 }
 0x14e   : > { %v626_v17 = vpop.f32.mrf.mxu0 }
 0x14f   : > { %v701_v39 = vadd.f32 %v626_v17, %v461_v33 }
 0x150   : > { %v628_v18 = vpop.f32.mrf.mxu0 }
 0x151   : > { %v1035_v19 = vpop.f32.mrf.mxu1  ;;  %v702_v41 = vadd.f32 %v628_v18, %v463_v35 }
 0x152   : > { %v795_v20 = vpop.f32.mrf.mxu0  ;;  %v1041_v36 = vadd.f32 %v1035_v19, %v872_v31 }
 0x153   : > { %v2076_v21 = vpop.f32.mrf.mxu1  ;;  %v870_v45 = vadd.f32 %v795_v20, %v701_v39 }
 0x154   : > { %v797_v22 = vpop.f32.mrf.mxu0 }
 0x155   : > { %v871_v46 = vadd.f32 %v797_v22, %v702_v41 }
 0x156   : > { %v964_v23 = vpop.f32.mrf.mxu0 }
 0x157   : > { %v1039_v48 = vadd.f32 %v964_v23, %v870_v45 }
 0x158   : > { %v966_v24 = vpop.f32.mrf.mxu0  ;;  %v1204_v25 = vpop.f32.mrf.mxu1 }
 0x159   : > { %v1210_v42 = vadd.f32 %v1204_v25, %v1041_v36  ;;  %v1040_v49 = vadd.f32 %v966_v24, %v871_v46 }
 0x15a   : > { %v2081_v26 = vpop.f32.mrf.mxu1  ;;  %v1133_v28 = vpop.f32.mrf.mxu0 }
 0x15b   : > { %v1208_v52 = vadd.f32 %v1133_v28, %v1039_v48 }
 0x15c   : > { %v1373_v29 = vpop.f32.mrf.mxu1  ;;  %v1135_v32 = vpop.f32.mrf.mxu0 }
 0x15d   : > { %v1379_v50 = vadd.f32 %v1373_v29, %v1210_v42  ;;  %v1209_v53 = vadd.f32 %v1135_v32, %v1040_v49 }
 0x15e   : > { %v2086_v30 = vpop.f32.mrf.mxu1 }
 0x161   : > { %v1302_v34 = vpop.f32.mrf.mxu0 }
 0x162   : > { %v1377_v56 = vadd.f32 %v1302_v34, %v1208_v52 }
 0x163   : > { %v1304_v37 = vpop.f32.mrf.mxu0 }
 0x164   : > { %v1542_v38 = vpop.f32.mrf.mxu1  ;;  %v1378_v57 = vadd.f32 %v1304_v37, %v1209_v53 }
 0x165   : > { %v1548_v54 = vadd.f32 %v1542_v38, %v1379_v50 }
 0x166   : > { %v2091_v40 = vpop.f32.mrf.mxu1  ;;  %v1471_v43 = vpop.f32.mrf.mxu0 }
 0x167   : > { %v1546_v61 = vadd.f32 %v1471_v43, %v1377_v56 }
 0x168   : > { %v1711_v44 = vpop.f32.mrf.mxu1  ;;  %v1473_v51 = vpop.f32.mrf.mxu0 }
 0x169   : > { %v1717_v58 = vadd.f32 %v1711_v44, %v1548_v54  ;;  %v1547_v62 = vadd.f32 %v1473_v51, %v1378_v57 }
 0x16a   : > { %v2096_v47 = vpop.f32.mrf.mxu1 }
 0x16d   : > { %v1640_v55 = vpop.f32.mrf.mxu0 }
 0x16e   : > { %v1715_v3 = vadd.f32 %v1640_v55, %v1546_v61 }
 0x16f   : > { %v1642_v59 = vpop.f32.mrf.mxu0 }
 0x170   : > { %v1880_v60 = vpop.f32.mrf.mxu1  ;;  %v1716_v4 = vadd.f32 %v1642_v59, %v1547_v62 }
 0x171   : > { %v1886_v63 = vadd.f32 %v1880_v60, %v1717_v58 }
 0x172   : > { %v1809_v1 = vpop.f32.mrf.mxu0  ;;  %v2101_v2 = vpop.f32.mrf.mxu1 }
 0x173   : > { %1893 = vst.msk [vmem:[%s214_s19 + $0x8] sm:$0xf] %vm1892_vm13, %v1886_v63  ;;  %v1884_v6 = vadd.f32 %v1809_v1, %v1715_v3 }
 0x174   : > { %v1811_v5 = vpop.f32.mrf.mxu0 }
 0x175   : > { %v1885_v7 = vadd.f32 %v1811_v5, %v1716_v4 }
 0x177   : > { %v1889_v8 = vcombine.low %v1884_v6, %v1885_v7 }
 0x179   : > { %1891 = vst [vmem:[%s214_s19] sm:$0xff] %v1889_v8 }
 0x17a PF: > { %s14_s15 = sadd.s32 1, %s2128_s15  }
 0x17b   : > { %p11_p4 = scmp.ge.s32.totalorder %s14_s15, 4  }
 0x17d   :  { %13 = sbr.rel (!%p11_p4) target bundleno = 1 (0x1), region = 77 }

</bundles_post_ra>
